<compile_context>
chip_gen: v5e
topology: v5e:2x2
jax: 0.10.0
libtpu: 0.0.40
codegen_flags: <defaults>
</compile_context>

<pallas_src>
import functools

import jax
import jax.numpy as jnp
from jax.experimental import pallas as pl
from jax.experimental.pallas import tpu as pltpu

PROBABILITY = 0.5
AMOUNT = 10
RADIUS = 50
KERNEL_SIZE = 25          # (25, 25)
SIGMA = (15.0, 20.0)


def _waterdrops_kernel(x_ref, mask_ref, bh_ref, bw_ref, out_ref, *, cb):
    """One grid step: blur + drop-select for `cb` channels.

    x_ref   : (cb, h, w) f32  original image channels
    mask_ref: (h, w)     f32  union drop mask (1.0 inside a drop), grid-invariant
    bh_ref  : (h, h)     f32  reflection-aware row-blur operator
    bw_ref  : (w, w)     f32  reflection-aware column-blur operator
    out_ref : (cb, h, w)
    """
    m = mask_ref[...] != 0.0          # channel-invariant bool mask
    bh = bh_ref[...]
    bw = bw_ref[...]

    def body(ci, carry):
        x = x_ref[ci]                                              # (h, w) f32
        t = jnp.dot(bh, x, preferred_element_type=jnp.float32)     # row blur
        blurred = jnp.dot(t, bw, preferred_element_type=jnp.float32)  # col blur
        out_ref[ci] = jnp.where(m, blurred, x).astype(out_ref.dtype)
        return carry

    if cb <= 4:
        # small blocks: static unroll is fine (review: unroll <= 4)
        for ci in range(cb):
            body(ci, 0)
    else:
        # large blocks: bound live ranges / VMEM intermediates with fori_loop
        jax.lax.fori_loop(0, cb, body, 0)


def _vmem_sizes():
    """(channel-block budget, vmem_limit_bytes), generation-aware."""
    cap = 64 * 1024 * 1024                        # conservative default (v7x)
    try:
        info = pltpu.get_tpu_info()
        cap = int(getattr(info, "vmem_capacity_bytes", cap))
    except Exception:
        pass
    if cap >= 128 * 1024 * 1024:                  # v5e / v6e: use the headroom
        return 90 * 1024 * 1024, 100 * 1024 * 1024
    return 36 * 1024 * 1024, 44 * 1024 * 1024     # v7x (64 MiB VMEM)


def _pick_channel_block(c, h, w, budget):
    """Largest channel block that divides C, fits VMEM, and keeps >=2 grid steps."""
    hw_bytes = h * w * 4
    per_chan = hw_bytes * 2 * 2                   # in + out block, double-buffered
    fixed = 2 * (h * h + w * w) * 4               # f32 band matrices, double-buffered
    fixed += 2 * hw_bytes                         # f32 mask, double-buffered
    fixed += 4 * hw_bytes                         # per-channel intermediates headroom
    cb = max(1, (budget - fixed) // max(per_chan, 1))
    cb = min(cb, c)
    if c > 1:
        cb = min(cb, -(-c // 2))                  # >=2 grid steps -> both v7x TCs busy
    cb = max(1, int(cb))
    while c % cb:
        cb -= 1
    return int(cb)


def _reflect_band(n, kernel1d, pad, ksize):
    """(n, n) operator M with (M @ x)[i] = sum_t k[t] * x[reflect(i + t - pad)].

    Reflect = torch 'reflect' padding (mirror without repeating the edge),
    folded directly into the band so no padded image copy is needed.
    """
    idx = (jnp.arange(n, dtype=jnp.int32)[:, None]
           + jnp.arange(ksize, dtype=jnp.int32)[None, :] - pad)     # (n, K)
    idx = jnp.where(idx < 0, -idx, idx)
    idx = jnp.where(idx >= n, 2 * (n - 1) - idx, idx)
    rows = jnp.broadcast_to(jnp.arange(n, dtype=jnp.int32)[:, None], idx.shape)
    kvals = jnp.broadcast_to(kernel1d[None, :].astype(jnp.float32), idx.shape)
    return jnp.zeros((n, n), jnp.float32).at[rows, idx].add(kvals)


def waterdrops(inp, key, *, probability=PROBABILITY, amount=AMOUNT,
               radius=RADIUS, kernel_size=KERNEL_SIZE, sigma=SIGMA):
    """inp: float32 array of shape (C, H, W)."""
    c, h, w = inp.shape
    pad = kernel_size // 2
    if h <= pad or w <= pad:
        # torch reflect padding requires pad < dim; mirror that constraint.
        raise ValueError(f"Waterdrops needs H,W > {pad}; got H={h}, W={w}")

    k_gate, k_sigma, k_ph, k_pw, k_rad = jax.random.split(key, 5)
    gate = jax.random.uniform(k_gate, ()) <= probability

    budget, vmem_limit = _vmem_sizes()
    cb = _pick_channel_block(c, h, w, budget)

    def _apply(x):
        # --- GaussianBlur params (torchvision: sigma ~ U(min,max), normalized 1D) ---
        sig = jax.random.uniform(k_sigma, (), minval=sigma[0], maxval=sigma[1])
        half = (kernel_size - 1) * 0.5
        xs = jnp.linspace(-half, half, kernel_size)
        pdf = jnp.exp(-0.5 * (xs / sig) ** 2)
        kernel1d = (pdf / pdf.sum()).astype(jnp.float32)

        # Reflection-aware band operators: blurred = BH @ x @ BW  (no jnp.pad pass).
        bh = _reflect_band(h, kernel1d, pad, kernel_size)          # (h, h)
        bw = _reflect_band(w, kernel1d, pad, kernel_size).T        # (w, w)

        # --- union drop mask, built once (channel/grid-invariant) ---
        # Reference quirk kept verbatim: X (column index) vs position[0]~U[0,h),
        # Y (row index) vs position[1]~U[0,w).
        pos_h = jax.random.randint(k_ph, (amount,), 0, h, dtype=jnp.int32)
        pos_w = jax.random.randint(k_pw, (amount,), 0, w, dtype=jnp.int32)
        rad = jax.random.randint(k_rad, (amount,), 0, radius, dtype=jnp.int32)
        xg = jnp.arange(w, dtype=jnp.int32)[None, None, :]          # X: columns
        yg = jnp.arange(h, dtype=jnp.int32)[None, :, None]          # Y: rows
        d2 = (xg - pos_h[:, None, None]) ** 2 + (yg - pos_w[:, None, None]) ** 2
        mask = jnp.any(d2 <= (rad * rad)[:, None, None], axis=0)    # (h, w) bool
        mask_f = mask.astype(jnp.float32)

        kernel = functools.partial(_waterdrops_kernel, cb=cb)
        return pl.pallas_call(
            kernel,
            out_shape=jax.ShapeDtypeStruct((c, h, w), x.dtype),
            grid_spec=pltpu.PrefetchScalarGridSpec(
                num_scalar_prefetch=0,
                grid=(c // cb,),
                in_specs=[
                    # raw image, cb channels per step
                    pl.BlockSpec((cb, h, w), lambda i: (i, 0, 0)),
                    # mask + band matrices: constant index_map -> fetched once, reused
                    pl.BlockSpec((h, w), lambda i: (0, 0)),
                    pl.BlockSpec((h, h), lambda i: (0, 0)),
                    pl.BlockSpec((w, w), lambda i: (0, 0)),
                ],
                out_specs=pl.BlockSpec((cb, h, w), lambda i: (i, 0, 0)),
            ),
            compiler_params=pltpu.CompilerParams(
                dimension_semantics=("parallel",),
                vmem_limit_bytes=vmem_limit,
            ),
        )(x, mask_f, bh, bw)

    # `if torch.rand(1) <= probability:` — skips the whole kernel when False.
    return jax.lax.cond(gate, _apply, lambda x: x, inp)


if __name__ == "__main__":
    key = jax.random.PRNGKey(0)
    k_inp, k_aug = jax.random.split(key)
    # small shapes consistent with the module: (C, H, W) image
    inp = jax.random.uniform(k_inp, (4, 16, 16), dtype=jnp.float32)

    # force the gate on so the Pallas kernel definitely executes
    out = jax.jit(functools.partial(waterdrops, probability=1.0))(inp, k_aug)
    jax.block_until_ready(out)
    assert out.shape == inp.shape and out.dtype == inp.dtype
    assert bool(jnp.all(jnp.isfinite(out)))

    # also exercise the default probability gate path (lax.cond)
    out2 = jax.jit(waterdrops)(inp, k_aug)
    jax.block_until_ready(out2)
    assert out2.shape == inp.shape

    print("KERNEL_OK")
</pallas_src>

<mosaic_0001>
module attributes {stable_mosaic.version = 11 : i64} {
  func.func @_waterdrops_kernel(%arg0: i32, %arg1: memref<2x16x16xf32, #tpu.memory_space<vmem>>, %arg2: memref<16x16xf32, #tpu.memory_space<vmem>>, %arg3: memref<16x16xf32, #tpu.memory_space<vmem>>, %arg4: memref<16x16xf32, #tpu.memory_space<vmem>>, %arg5: memref<2x16x16xf32, #tpu.memory_space<vmem>>) attributes {dimension_semantics = [#tpu.dimension_semantics<parallel>], iteration_bounds = array<i64: 2>, scalar_prefetch = 0 : i64, scratch_operands = 0 : i64, tpu.core_type = #tpu.core_type<tc>, window_params = [{transform_indices = @transform_0, window_bounds = array<i64: 2, 16, 16>}, {pipeline_mode = #tpu.pipeline_mode<synchronous>, transform_indices = @transform_1, window_bounds = array<i64: 16, 16>}, {pipeline_mode = #tpu.pipeline_mode<synchronous>, transform_indices = @transform_2, window_bounds = array<i64: 16, 16>}, {pipeline_mode = #tpu.pipeline_mode<synchronous>, transform_indices = @transform_3, window_bounds = array<i64: 16, 16>}, {transform_indices = @transform_4, window_bounds = array<i64: 2, 16, 16>}]} {
    %c0 = arith.constant 0 : index
    %c0_0 = arith.constant 0 : index
    %0 = vector.load %arg2[%c0, %c0_0] : memref<16x16xf32, #tpu.memory_space<vmem>>, vector<16x16xf32>
    %cst = arith.constant 0.000000e+00 : f32
    %1 = vector.broadcast %cst : f32 to vector<16x16xf32>
    %2 = arith.cmpf one, %0, %1 : vector<16x16xf32>
    %c0_1 = arith.constant 0 : index
    %c0_2 = arith.constant 0 : index
    %3 = vector.load %arg3[%c0_1, %c0_2] : memref<16x16xf32, #tpu.memory_space<vmem>>, vector<16x16xf32>
    %c0_3 = arith.constant 0 : index
    %c0_4 = arith.constant 0 : index
    %4 = vector.load %arg4[%c0_3, %c0_4] : memref<16x16xf32, #tpu.memory_space<vmem>>, vector<16x16xf32>
    %c0_5 = arith.constant 0 : index
    %c0_6 = arith.constant 0 : index
    %c0_7 = arith.constant 0 : index
    %5 = vector.load %arg1[%c0_5, %c0_6, %c0_7] : memref<2x16x16xf32, #tpu.memory_space<vmem>>, vector<1x16x16xf32>
    %6 = vector.shape_cast %5 : vector<1x16x16xf32> to vector<16x16xf32>
    %cst_8 = arith.constant dense<0.000000e+00> : vector<16x16xf32>
    %7 = tpu.matmul %3, %6, %cst_8 {dimension_numbers = #tpu.dot_dimension_numbers<[1], [0], [0], [1], [0, 0, 1, 1], [], []>} : vector<16x16xf32>, vector<16x16xf32>, vector<16x16xf32> -> vector<16x16xf32>
    %cst_9 = arith.constant dense<0.000000e+00> : vector<16x16xf32>
    %8 = tpu.matmul %7, %4, %cst_9 {dimension_numbers = #tpu.dot_dimension_numbers<[1], [0], [0], [1], [0, 0, 1, 1], [], []>} : vector<16x16xf32>, vector<16x16xf32>, vector<16x16xf32> -> vector<16x16xf32>
    %9 = arith.select %2, %8, %6 : vector<16x16xi1>, vector<16x16xf32>
    %c0_10 = arith.constant 0 : index
    %c0_11 = arith.constant 0 : index
    %c0_12 = arith.constant 0 : index
    %10 = vector.load %arg5[%c0_10, %c0_11, %c0_12] : memref<2x16x16xf32, #tpu.memory_space<vmem>>, vector<1x16x16xf32>
    %11 = vector.shape_cast %10 : vector<1x16x16xf32> to vector<16x16xf32>
    %12 = vector.shape_cast %9 : vector<16x16xf32> to vector<1x16x16xf32>
    tpu.vector_store %arg5[%c0_10, %c0_11, %c0_12], %12 {strides = array<i32>} : memref<2x16x16xf32, #tpu.memory_space<vmem>>, vector<1x16x16xf32>,
    %c1 = arith.constant 1 : index
    %c0_13 = arith.constant 0 : index
    %c0_14 = arith.constant 0 : index
    %13 = vector.load %arg1[%c1, %c0_13, %c0_14] : memref<2x16x16xf32, #tpu.memory_space<vmem>>, vector<1x16x16xf32>
    %14 = vector.shape_cast %13 : vector<1x16x16xf32> to vector<16x16xf32>
    %cst_15 = arith.constant dense<0.000000e+00> : vector<16x16xf32>
    %15 = tpu.matmul %3, %14, %cst_15 {dimension_numbers = #tpu.dot_dimension_numbers<[1], [0], [0], [1], [0, 0, 1, 1], [], []>} : vector<16x16xf32>, vector<16x16xf32>, vector<16x16xf32> -> vector<16x16xf32>
    %cst_16 = arith.constant dense<0.000000e+00> : vector<16x16xf32>
    %16 = tpu.matmul %15, %4, %cst_16 {dimension_numbers = #tpu.dot_dimension_numbers<[1], [0], [0], [1], [0, 0, 1, 1], [], []>} : vector<16x16xf32>, vector<16x16xf32>, vector<16x16xf32> -> vector<16x16xf32>
    %17 = arith.select %2, %16, %14 : vector<16x16xi1>, vector<16x16xf32>
    %c1_17 = arith.constant 1 : index
    %c0_18 = arith.constant 0 : index
    %c0_19 = arith.constant 0 : index
    %18 = vector.load %arg5[%c1_17, %c0_18, %c0_19] : memref<2x16x16xf32, #tpu.memory_space<vmem>>, vector<1x16x16xf32>
    %19 = vector.shape_cast %18 : vector<1x16x16xf32> to vector<16x16xf32>
    %20 = vector.shape_cast %17 : vector<16x16xf32> to vector<1x16x16xf32>
    tpu.vector_store %arg5[%c1_17, %c0_18, %c0_19], %20 {strides = array<i32>} : memref<2x16x16xf32, #tpu.memory_space<vmem>>, vector<1x16x16xf32>,
    return
  }
  func.func @transform_0(%arg0: i32) -> (i32, i32, i32) {
    %c0_i32 = arith.constant 0 : i32
    %c0_i32_0 = arith.constant 0 : i32
    %c0_i32_1 = arith.constant 0 : i32
    return %arg0, %c0_i32, %c0_i32_0 : i32, i32, i32
  }
  func.func @transform_1(%arg0: i32) -> (i32, i32) {
    %c0_i32 = arith.constant 0 : i32
    %c0_i32_0 = arith.constant 0 : i32
    %c0_i32_1 = arith.constant 0 : i32
    return %c0_i32, %c0_i32_0 : i32, i32
  }
  func.func @transform_2(%arg0: i32) -> (i32, i32) {
    %c0_i32 = arith.constant 0 : i32
    %c0_i32_0 = arith.constant 0 : i32
    %c0_i32_1 = arith.constant 0 : i32
    return %c0_i32, %c0_i32_0 : i32, i32
  }
  func.func @transform_3(%arg0: i32) -> (i32, i32) {
    %c0_i32 = arith.constant 0 : i32
    %c0_i32_0 = arith.constant 0 : i32
    %c0_i32_1 = arith.constant 0 : i32
    return %c0_i32, %c0_i32_0 : i32, i32
  }
  func.func @transform_4(%arg0: i32) -> (i32, i32, i32) {
    %c0_i32 = arith.constant 0 : i32
    %c0_i32_0 = arith.constant 0 : i32
    %c0_i32_1 = arith.constant 0 : i32
    return %arg0, %c0_i32, %c0_i32_0 : i32, i32, i32
  }
}

</mosaic_0001>

<bundles_post_ra>
// kernel: branch_1_fun.1
= control target key start
LH: loop header
LB: loop body
LE: loop exit
PB: predicated region body
PF: predicated region fallthrough
CT: control target
= control target key end

     0   :  { %9 = vsyncpa [#allocation3], 0  ;;  %s689_s0 = inlined_call_operand.vmem [shape: f32[4,16,16], index: 0, kind: input, shape index: {}]   ;;  %s690_s1 = inlined_call_operand.vmem [shape: f32[16,16], index: 1, kind: input, shape index: {}]   ;;  %s691_s2 = inlined_call_operand.vmem [shape: f32[16,16], index: 2, kind: input, shape index: {}]   ;;  %s692_s3 = inlined_call_operand.vmem [shape: f32[16,16], index: 3, kind: input, shape index: {}]   ;;  %s693_s4 = inlined_call_operand.hbm [shape: f32[4,16,16], index: 4, kind: output, shape index: {}]  }
   0x1   :  { %11 = vsyncpa [#allocation3 + $0x1], 0  ;;  %s575_s15 = smov 0   ;;  %s577_s16 = smov 0  }
   0x2   :  { %s579_s17 = smov 0   ;;  %s581_s18 = smov 0  }
   0x3 LB: > { %s596_s19 = sadd.s32 4294967295, %s546_s18   ;;  %s414_s20 = sadd.s32 4294967294, %s546_s18   ;;  %s546_s18 = sphi %s581_s18, %s699_s18   ;;  %s542_s17 = sphi %s579_s17, %s698_s17   ;;  %s538_s16 = sphi %s577_s16, %s697_s16   ;;  %s534_s15 = sphi %s575_s15, %s696_s15  }
   0x4   : > { %s600_s21 = sadd.s32 1, %s546_s18   ;;  %s113_s22 = sadd.s32 1, %s542_s17 }
   0x5   : > { %s110_s23 = ssub.s32 %s546_s18, %s600_s21  ;;  %p123_p0 = scmp.ne.s32.totalorder %s542_s17, %s538_s16 }
   0x6   : > { %p111_p1 = scmp.eq.s32.totalorder %s110_s23, 0  ;;  %p124_p2 = scmp.eq.s32.totalorder %s596_s19, 1 }
   0x7   : > { %p129_p3 = scmp.ne.s32.totalorder %s538_s16, %s534_s15  ;;  %p130_p4 = scmp.eq.s32.totalorder %s414_s20, 1 }
   0x8   : > { %s611_s24 = scalar_select %p111_p1, %s542_s17, %s113_s22  }
   0x9   : > { %p613_p5 = por %p124_p2, %p123_p0  ;;  %p617_p6 = por %p130_p4, %p129_p3 }
   0xa   : > { %p417_p7 = scmp.ge.s32.totalorder %s546_s18, 1  ;;  %p167_p8 = scmp.lt.s32.totalorder %s546_s18, 3 }
   0xc   : > { %p168_p9 = pnand %p417_p7, %p167_p8 }
   0xd   : > { %s419_s27 = sshll.u32 (!%p168_p9), %s596_s19, 1  ;;  %s191_s14 = sand.u32 (!%p168_p9), 1, %s538_s16  }
   0xe   : > { %171 = sbr.rel (%p168_p9) target bundleno = 303 (0x12f), region = 36  ;;  %p195_p10 = scmp.lt.s32.totalorder (!%p168_p9), %s419_s27, 3 }
   0xf   : > { %s418_s23 = sshll.u32 (!%p168_p9), %s191_s14, 5  ;;  %s336_s10 = scalar_lea.sflag (!%p168_p9), [#allocation3], %s191_s14 }
  0x10   : > { %s504_s20 = scalar_lea.hbm (!%p168_p9), %s693_s4, 64 }
  0x13   : > { %v209_v0 = vld [vmem:[%s692_s3 + $0x8] sm:$0xff]  ;;  %s701_s27 = smov (!%p195_p10, %s419_s27), 3  ;;  %v206_v4 = vld [vmem:[%s691_s2] sm:$0xff]  ;;  %vm212_vm0 = vcmask 130048  }
  0x14   : > { %321 = vmatpush.msra.mxu3 %v209_v0  ;;  %262 = vmatpush.msra.mxu1 %v209_v0  ;;  %s440_s30 = sshll.u32 %s701_s27, 4  ;;  %v207_v6 = vld [vmem:[%s691_s2 + $0x8] sm:$0xff]  ;;  %v208_v7 = vld [vmem:[%s692_s3] sm:$0xff]  ;;  %s193_s27 = scalar_lea.vmem [#allocation2], %s418_s23 }
  0x15   : > { %s199_s7 = scalar_lea.vmem %s689_s0, %s440_s30  ;;  %v202_v12 = vld [vmem:[%s690_s1] sm:$0xff]  ;;  %v203_v15 = vld [vmem:[%s690_s1 + $0x8] sm:$0xff]  ;;  %s442_s30 = sshll.u32 %s596_s19, 5 }
  0x16   : > { %v427_v1 = vld [vmem:[%s199_s7 + $0x18] sm:$0xff]  ;;  %v426_v2 = vld [vmem:[%s199_s7 + $0x10] sm:$0xff]  ;;  %v211_v3 = vld [vmem:[%s199_s7 + $0x8] sm:$0xff]  ;;  %322 = vmatpush.msra.mxu3 %v208_v7  ;;  %263 = vmatpush.msra.mxu1 %v208_v7  ;;  %vm204_vm1 = vcmp.ne.f32.partialorder %v202_v12, 0.0  ;;  %vm205_vm2 = vcmp.ne.f32.partialorder %v203_v15, 0.0  ;;  %s349_s8 = sshll.u32 %s193_s27, 4  ;;  %s350_s8 = int_to_ptr.vmem [resolvable:$true] %s349_s8 }
  0x17   : > { %292 = vmatpush.msra.mxu2 %v427_v1  ;;  %233 = vmatpush.msra.mxu0 %v211_v3  ;;  %v210_v5 = vld [vmem:[%s199_s7] sm:$0xff]  ;;  %s348_s7 = scalar_lea.hbm %s693_s4, %s442_s30 }
  0x18   : > { %s351_s9 = sshll.u32 %s348_s7, 4  ;;  %s352_s9 = int_to_ptr.hbm [resolvable:$true] %s351_s9 }
  0x19   : > { %293 = vmatpush.msra.mxu2 %v426_v2  ;;  %234 = vmatpush.msra.mxu0 %v210_v5  ;;  %s498_s11 = sshra.s32 %s352_s9, 4  ;;  %s499_s11 = int_to_ptr.hbm [resolvable:$true] %s498_s11 }
  0x1a   : > { %428 = vmatmul.msk.f32.vlgmr.msra.gmra.mxu2 %vm212_vm0, %v206_v4  ;;  %422 = vmatmul.msk.f32.vlgmr.msra.gmra.mxu0 %vm212_vm0, %v206_v4  ;;  %s500_s19 = scalar_lea.hbm %s499_s11, 32  ;;  %p505_p0 = scmp.lt.s32.totalorder %s499_s11, %s693_s4 }
  0x1b   : > { %p501_p11 = scmp.ne.s32.totalorder %s499_s11, %s500_s19  ;;  %p506_p1 = scmp.lt.s32.totalorder %s504_s20, %s500_s19 }
  0x1d   : > { %p502_p12 = pnand %p501_p11, %p613_p5  ;;  %p507_p2 = por %p506_p1, %p505_p0 }
  0x1f   : > { %p503_p13 = pneg %p502_p12 }
  0x21   : > { %p508_p3 = pnand %p507_p2, %p503_p13 }
  0x22   : > { %429 = vmatmul.msk.f32.gmra.mxu2 %vm212_vm0, %v207_v6  ;;  %423 = vmatmul.msk.f32.gmra.mxu0 %vm212_vm0, %v207_v6 }
  0x97   : > { %v236_v8 = vpop.f32.mrf.mxu0 }
  0x98   : > { %424 = vmatmul.msk.f32.vlgmr.msra.gmra.mxu1 %vm212_vm0, %v236_v8 }
  0x9d   : > { %v295_v9 = vpop.f32.mrf.mxu2 }
  0x9e   : > { %430 = vmatmul.msk.f32.vlgmr.msra.gmra.mxu3 %vm212_vm0, %v295_v9 }
  0x9f   : > { %v239_v10 = vpop.f32.mrf.mxu0 }
  0xa0   : > { %425 = vmatmul.msk.f32.gmra.mxu1 %vm212_vm0, %v239_v10 }
  0xa5   : > { %v298_v11 = vpop.f32.mrf.mxu2 }
  0xa6   : > { %431 = vmatmul.msk.f32.gmra.mxu3 %vm212_vm0, %v298_v11 }
 0x115   : > { %v265_v13 = vpop.f32.mrf.mxu1 }
 0x116   : > { %v271_v14 = vsel %vm204_vm1, %v265_v13, %v210_v5 }
 0x117   : > { %273 = vst.msk [vmem:[%s193_s27] sm:$0xff] %vm212_vm0, %v271_v14 }
 0x11d   : > { %v268_v16 = vpop.f32.mrf.mxu1 }
 0x11e   : > { %v272_v17 = vsel %vm205_vm2, %v268_v16, %v211_v3 }
 0x11f   : > { %274 = vst.msk [vmem:[%s193_s27 + $0x8] sm:$0xff] %vm212_vm0, %v272_v17 }
 0x121   : > { %v324_v18 = vpop.f32.mrf.mxu3 }
 0x122   : > { %v330_v19 = vsel %vm204_vm1, %v324_v18, %v426_v2 }
 0x123   : > { %432 = vst.msk [vmem:[%s193_s27 + $0x10] sm:$0xff] %vm212_vm0, %v330_v19 }
 0x129   : > { %v327_v20 = vpop.f32.mrf.mxu3 }
 0x12a   : > { %v331_v21 = vsel %vm205_vm2, %v327_v20, %v427_v1 }
 0x12b   : > { %433 = vst.msk [vmem:[%s193_s27 + $0x18] sm:$0xff] %vm212_vm0, %v331_v21 }
 0x12c   : > { %511 = shalt.err (!%p508_p3)
}
 0x12d   : > { %s548_s14 = smov 128   ;;  %s549_s27 = smov 8  }
 0x12e   : > { %443 = dma.vmem_to_hbm [thread:$0]  (%p613_p5), %s350_s8, 512, %s352_s9, %s336_s10, %s548_s14, %s548_s14, %s549_s27  }
 0x12f PF: > { %p449_p4 = scmp.ge.s32.totalorder %s546_s18, 2  ;;  %s366_s28 = sand.u32 1, %s534_s15  }
 0x130   : > { %s367_s29 = scalar_lea.sflag [#allocation3], %s366_s28 }
 0x131   : > { %p446_p7 = pnand %p449_p4, %p617_p6 }
 0x133   : > { %p447_p8 = pneg %p446_p7 }
 0x135   : > { %529 = dma.done.wait (%p447_p8), %s367_s29, 512  }
 0x136   : > { %531 = vsyncadd (%p447_p8), %s367_s29, 4294966784  ;;  %p14_p9 = scmp.ge.s32.totalorder %s600_s21, 4   ;;  %s696_s15 = smov %s538_s16 }
 0x137   : > { %s697_s16 = smov %s542_s17  ;;  %s698_s17 = smov %s611_s24 }
 0x138   : > { %s699_s18 = smov %s600_s21  ;;  %16 = sbr.rel (!%p14_p9) target bundleno = 3 (0x3), region = 73 }
 0x13d   :  { %373 = vsyncpa [#allocation3], 1 }
 0x13e   :  { %375 = vsyncpa [#allocation3 + $0x1], 1 }

</bundles_post_ra>
